<compile_context>
chip_gen: v5e
topology: v5e:2x2
jax: 0.10.0
libtpu: 0.0.40
codegen_flags: <defaults>
</compile_context>

<pallas_src>
from functools import partial

import numpy as np
import jax
import jax.numpy as jnp
from jax import lax
from jax.experimental import pallas as pl
from jax.experimental.pallas import tpu as pltpu


def encoder_layer_kernel(x_ref, mask_ref,
                         wq_ref, wk_ref, wv_ref, wo_ref,
                         g1_ref, b1_ref, w1_ref, w2_ref, g2_ref, b2_ref,
                         out_ref, attn_ref,
                         acc_ref, neg_ref,
                         *, scale, eps=1e-5):
    h = pl.program_id(1)
    n_h = pl.num_programs(1)

    x = x_ref[0]                                   # [S, D] f32 (kept f32 for residuals)
    xb = x.astype(jnp.bfloat16)

    # ---- per-batch init (hoisted out of the per-head steps) ----
    @pl.when(h == 0)
    def _():
        acc_ref[...] = jnp.zeros_like(acc_ref)
        # additive mask built once per batch step: -1e9 where masked, 0 otherwise
        neg_ref[...] = jnp.where(mask_ref[0] > 0.5, jnp.float32(-1e9), jnp.float32(0.0))

    # ---- this head's projections (per-head weight slice delivered by BlockSpec) ----
    q = jnp.dot(xb, wq_ref[0], preferred_element_type=jnp.float32)   # [S, d_q]
    k = jnp.dot(xb, wk_ref[0], preferred_element_type=jnp.float32)   # [S, d_k]
    v = jnp.dot(xb, wv_ref[0], preferred_element_type=jnp.float32)   # [S, d_v]

    q = q * jnp.float32(scale)                     # compile-time constant 1/sqrt(d_k)

    # scores = q @ k^T without materializing a transpose
    scores = lax.dot_general(q.astype(jnp.bfloat16), k.astype(jnp.bfloat16),
                             dimension_numbers=(((1,), (1,)), ((), ())),
                             preferred_element_type=jnp.float32)     # [S, S]
    scores = scores + neg_ref[...]

    # ---- softmax (f32; attn probs are a checked kernel output, keep exact divide) ----
    m = jnp.max(scores, axis=-1, keepdims=True)
    e = jnp.exp(scores - m)
    a = e / jnp.sum(e, axis=-1, keepdims=True)                       # [S, S]

    attn_ref[0, 0] = a                             # per-(batch, head) tile

    # context for this head, and its contribution to the output projection
    ab = a.astype(jnp.bfloat16)
    ctx = jnp.dot(ab, v.astype(jnp.bfloat16),
                  preferred_element_type=jnp.float32)                # [S, d_v]
    acc_ref[...] += jnp.dot(ctx.astype(jnp.bfloat16), wo_ref[0],
                            preferred_element_type=jnp.float32)      # [S, D]

    # ---- epilogue on the last head: residual + LN1, FFN, residual + LN2 ----
    @pl.when(h == n_h - 1)
    def _():
        attn_out = acc_ref[...] + x
        mu1 = jnp.mean(attn_out, axis=-1, keepdims=True)
        var1 = jnp.mean((attn_out - mu1) ** 2, axis=-1, keepdims=True)
        ln1 = (attn_out - mu1) * lax.rsqrt(var1 + eps) * g1_ref[...] + b1_ref[...]

        hdn = jnp.maximum(jnp.dot(ln1.astype(jnp.bfloat16), w1_ref[...],
                                  preferred_element_type=jnp.float32), 0.0)   # [S, d_ff]
        ff = jnp.dot(hdn.astype(jnp.bfloat16), w2_ref[...],
                     preferred_element_type=jnp.float32) + ln1                # [S, D]
        mu2 = jnp.mean(ff, axis=-1, keepdims=True)
        var2 = jnp.mean((ff - mu2) ** 2, axis=-1, keepdims=True)
        ln2 = (ff - mu2) * lax.rsqrt(var2 + eps) * g2_ref[...] + b2_ref[...]

        out_ref[0] = ln2


def init_params(key, d_model, d_ff, d_q, d_k, d_v, n_heads):
    ks = jax.random.split(key, 6)

    def lin(k, fan_in, fan_out):
        # mimic nn.Linear default init (uniform +/- 1/sqrt(fan_in)), stored as [in, out]
        bound = 1.0 / np.sqrt(fan_in)
        return jax.random.uniform(k, (fan_in, fan_out), jnp.float32, -bound, bound)

    return dict(
        wq=lin(ks[0], d_model, d_q * n_heads),
        wk=lin(ks[1], d_model, d_k * n_heads),
        wv=lin(ks[2], d_model, d_v * n_heads),
        wo=lin(ks[3], d_v * n_heads, d_model),
        g1=jnp.ones((1, d_model), jnp.float32),
        b1=jnp.zeros((1, d_model), jnp.float32),
        w1=lin(ks[4], d_model, d_ff),
        w2=lin(ks[5], d_ff, d_model),
        g2=jnp.ones((1, d_model), jnp.float32),
        b2=jnp.zeros((1, d_model), jnp.float32),
    )


def encoder_layer(x, mask, params, *, n_heads, d_q, d_k, d_v):
    B, S, D = x.shape
    H = n_heads
    d_ff = params['w1'].shape[1]

    # Per-head weight layout [H, in, out]: each (b, h) grid step DMAs exactly one head's
    # slice -> no in-kernel lane slicing.  bf16 weights halve HBM->VMEM DMA bytes.
    wq3 = params['wq'].reshape(D, H, d_q).transpose(1, 0, 2).astype(jnp.bfloat16)
    wk3 = params['wk'].reshape(D, H, d_k).transpose(1, 0, 2).astype(jnp.bfloat16)
    wv3 = params['wv'].reshape(D, H, d_v).transpose(1, 0, 2).astype(jnp.bfloat16)
    wo3 = params['wo'].reshape(H, d_v, D).astype(jnp.bfloat16)
    w1b = params['w1'].astype(jnp.bfloat16)
    w2b = params['w2'].astype(jnp.bfloat16)

    kernel = partial(encoder_layer_kernel, scale=float(d_k) ** -0.5)

    in_specs = [
        pl.BlockSpec((1, S, D), lambda b, h: (b, 0, 0)),        # x (re-DMA'd only when b changes)
        pl.BlockSpec((1, S, S), lambda b, h: (b, 0, 0)),        # mask (only when b changes)
        pl.BlockSpec((1, D, d_q), lambda b, h: (h, 0, 0)),      # Wq, head slice
        pl.BlockSpec((1, D, d_k), lambda b, h: (h, 0, 0)),      # Wk, head slice
        pl.BlockSpec((1, D, d_v), lambda b, h: (h, 0, 0)),      # Wv, head slice
        pl.BlockSpec((1, d_v, D), lambda b, h: (h, 0, 0)),      # Wo, head slice
        pl.BlockSpec((1, D), lambda b, h: (0, 0)),              # LN1 gamma (resident)
        pl.BlockSpec((1, D), lambda b, h: (0, 0)),              # LN1 beta
        pl.BlockSpec((D, d_ff), lambda b, h: (0, 0)),           # FFN W1 (resident)
        pl.BlockSpec((d_ff, D), lambda b, h: (0, 0)),           # FFN W2 (resident)
        pl.BlockSpec((1, D), lambda b, h: (0, 0)),              # LN2 gamma
        pl.BlockSpec((1, D), lambda b, h: (0, 0)),              # LN2 beta
    ]
    out_specs = [
        pl.BlockSpec((1, S, D), lambda b, h: (b, 0, 0)),        # encoder output (written at last h)
        pl.BlockSpec((1, 1, S, S), lambda b, h: (b, h, 0, 0)),  # attention, tiled per head
    ]
    out_shape = (
        jax.ShapeDtypeStruct((B, S, D), jnp.float32),
        jax.ShapeDtypeStruct((B, H, S, S), jnp.float32),
    )

    flops = 2 * B * (S * D * H * (d_q + d_k + d_v)   # QKV projections
                     + H * S * S * (d_k + d_v)       # scores + context
                     + S * H * d_v * D               # output projection
                     + 2 * S * D * d_ff)             # FFN
    bytes_accessed = (x.size * 4 + mask.size * 4
                      + 2 * (wq3.size + wk3.size + wv3.size + wo3.size + w1b.size + w2b.size)
                      + 4 * (4 * D)
                      + B * S * D * 4 + B * H * S * S * 4)

    return pl.pallas_call(
        kernel,
        out_shape=out_shape,
        grid_spec=pltpu.PrefetchScalarGridSpec(
            num_scalar_prefetch=0,
            grid=(B, H),
            in_specs=in_specs,
            out_specs=out_specs,
            scratch_shapes=[pltpu.VMEM((S, D), jnp.float32),    # output-projection accumulator
                            pltpu.VMEM((S, S), jnp.float32)],   # additive mask (built once per batch)
        ),
        compiler_params=pltpu.CompilerParams(
            dimension_semantics=("parallel", "arbitrary")),
        cost_estimate=pl.CostEstimate(flops=int(flops),
                                      transcendentals=int(B * H * S * S),
                                      bytes_accessed=int(bytes_accessed)),
    )(x, mask, wq3, wk3, wv3, wo3,
      params['g1'], params['b1'], w1b, w2b, params['g2'], params['b2'])


# ---------------- pure-JAX f32 reference (same math as the PyTorch module) ----------------
def encoder_layer_ref(x, mask, params, *, n_heads, d_q, d_k, d_v, eps=1e-5):
    B, S, D = x.shape
    H = n_heads
    q = (x @ params['wq']).reshape(B, S, H, d_q).transpose(0, 2, 1, 3)
    k = (x @ params['wk']).reshape(B, S, H, d_k).transpose(0, 2, 1, 3)
    v = (x @ params['wv']).reshape(B, S, H, d_v).transpose(0, 2, 1, 3)
    scores = jnp.einsum('bhqd,bhkd->bhqk', q, k) / jnp.sqrt(jnp.float32(d_k))
    scores = jnp.where(mask[:, None, :, :] > 0.5, -1e9, scores)
    attn = jax.nn.softmax(scores, axis=-1)
    ctx = jnp.einsum('bhqk,bhkd->bhqd', attn, v).transpose(0, 2, 1, 3).reshape(B, S, H * d_v)
    ao = ctx @ params['wo'] + x
    mu = ao.mean(-1, keepdims=True)
    var = ((ao - mu) ** 2).mean(-1, keepdims=True)
    ln1 = (ao - mu) * jax.lax.rsqrt(var + eps) * params['g1'] + params['b1']
    ff = jnp.maximum(ln1 @ params['w1'], 0.0) @ params['w2'] + ln1
    mu2 = ff.mean(-1, keepdims=True)
    var2 = ((ff - mu2) ** 2).mean(-1, keepdims=True)
    ln2 = (ff - mu2) * jax.lax.rsqrt(var2 + eps) * params['g2'] + params['b2']
    return ln2, attn


if __name__ == "__main__":
    B, S = 2, 8
    d_model, d_ff, d_q, d_k, d_v, n_heads = 32, 64, 16, 16, 16, 4

    key = jax.random.PRNGKey(0)
    kx, kp = jax.random.split(key)
    x = jax.random.normal(kx, (B, S, d_model), jnp.float32)

    # pad-style mask: last 2 key positions masked for every query (1.0 = masked)
    pad = jnp.zeros((B, S), jnp.float32).at[:, -2:].set(1.0)
    mask = jnp.broadcast_to(pad[:, None, :], (B, S, S))

    params = init_params(kp, d_model, d_ff, d_q, d_k, d_v, n_heads)

    out, attn = encoder_layer(x, mask, params, n_heads=n_heads, d_q=d_q, d_k=d_k, d_v=d_v)
    jax.block_until_ready((out, attn))

    assert out.shape == (B, S, d_model)
    assert attn.shape == (B, n_heads, S, S)

    out_r, attn_r = encoder_layer_ref(x, mask, params, n_heads=n_heads, d_q=d_q, d_k=d_k, d_v=d_v)
    # tolerance loosened slightly vs the f32 reference because MXU inputs are bf16
    np.testing.assert_allclose(np.asarray(out), np.asarray(out_r), rtol=3e-2, atol=3e-2)
    np.testing.assert_allclose(np.asarray(attn), np.asarray(attn_r), rtol=2e-2, atol=2e-2)

    print("KERNEL_OK")
</pallas_src>

<mosaic_0001>
module attributes {stable_mosaic.version = 11 : i64} {
  func.func @encoder_layer_kernel(%arg0: i32, %arg1: i32, %arg2: memref<1x8x32xf32, #tpu.memory_space<vmem>>, %arg3: memref<1x8x8xf32, #tpu.memory_space<vmem>>, %arg4: memref<1x32x16xbf16, #tpu.memory_space<vmem>>, %arg5: memref<1x32x16xbf16, #tpu.memory_space<vmem>>, %arg6: memref<1x32x16xbf16, #tpu.memory_space<vmem>>, %arg7: memref<1x16x32xbf16, #tpu.memory_space<vmem>>, %arg8: memref<1x32xf32, #tpu.memory_space<vmem>>, %arg9: memref<1x32xf32, #tpu.memory_space<vmem>>, %arg10: memref<32x64xbf16, #tpu.memory_space<vmem>>, %arg11: memref<64x32xbf16, #tpu.memory_space<vmem>>, %arg12: memref<1x32xf32, #tpu.memory_space<vmem>>, %arg13: memref<1x32xf32, #tpu.memory_space<vmem>>, %arg14: memref<1x8x32xf32, #tpu.memory_space<vmem>>, %arg15: memref<1x1x8x8xf32, #tpu.memory_space<vmem>>, %arg16: memref<8x32xf32, #tpu.memory_space<vmem>>, %arg17: memref<8x8xf32, #tpu.memory_space<vmem>>) attributes {dimension_semantics = [#tpu.dimension_semantics<parallel>, #tpu.dimension_semantics<arbitrary>], iteration_bounds = array<i64: 2, 4>, scalar_prefetch = 0 : i64, scratch_operands = 2 : i64, tpu.core_type = #tpu.core_type<tc>, window_params = [{transform_indices = @transform_0, window_bounds = array<i64: 1, 8, 32>}, {transform_indices = @transform_1, window_bounds = array<i64: 1, 8, 8>}, {transform_indices = @transform_2, window_bounds = array<i64: 1, 32, 16>}, {transform_indices = @transform_3, window_bounds = array<i64: 1, 32, 16>}, {transform_indices = @transform_4, window_bounds = array<i64: 1, 32, 16>}, {transform_indices = @transform_5, window_bounds = array<i64: 1, 16, 32>}, {pipeline_mode = #tpu.pipeline_mode<synchronous>, transform_indices = @transform_6, window_bounds = array<i64: 1, 32>}, {pipeline_mode = #tpu.pipeline_mode<synchronous>, transform_indices = @transform_7, window_bounds = array<i64: 1, 32>}, {pipeline_mode = #tpu.pipeline_mode<synchronous>, transform_indices = @transform_8, window_bounds = array<i64: 32, 64>}, {pipeline_mode = #tpu.pipeline_mode<synchronous>, transform_indices = @transform_9, window_bounds = array<i64: 64, 32>}, {pipeline_mode = #tpu.pipeline_mode<synchronous>, transform_indices = @transform_10, window_bounds = array<i64: 1, 32>}, {pipeline_mode = #tpu.pipeline_mode<synchronous>, transform_indices = @transform_11, window_bounds = array<i64: 1, 32>}, {transform_indices = @transform_12, window_bounds = array<i64: 1, 8, 32>}, {transform_indices = @transform_13, window_bounds = array<i64: 1, 1, 8, 8>}]} {
    %c0 = arith.constant 0 : index
    %c0_0 = arith.constant 0 : index
    %c0_1 = arith.constant 0 : index
    %0 = vector.load %arg2[%c0, %c0_0, %c0_1] : memref<1x8x32xf32, #tpu.memory_space<vmem>>, vector<1x8x32xf32>
    %1 = vector.shape_cast %0 : vector<1x8x32xf32> to vector<8x32xf32>
    %2 = arith.truncf %1 : vector<8x32xf32> to vector<8x32xbf16>
    %c0_i32 = arith.constant 0 : i32
    %3 = arith.cmpi eq, %arg1, %c0_i32 : i32
    %4 = arith.extui %3 : i1 to i32
    %c0_i32_2 = arith.constant 0 : i32
    %5 = arith.cmpi ne, %4, %c0_i32_2 : i32
    scf.if %5 {
      %cst_34 = arith.constant 0.000000e+00 : f32
      %47 = vector.broadcast %cst_34 : f32 to vector<8x32xf32>
      %c0_35 = arith.constant 0 : index
      %c0_36 = arith.constant 0 : index
      %48 = vector.load %arg16[%c0_35, %c0_36] : memref<8x32xf32, #tpu.memory_space<vmem>>, vector<8x32xf32>
      tpu.vector_store %arg16[%c0_35, %c0_36], %47 {strides = array<i32>} : memref<8x32xf32, #tpu.memory_space<vmem>>, vector<8x32xf32>,
      %c0_37 = arith.constant 0 : index
      %c0_38 = arith.constant 0 : index
      %c0_39 = arith.constant 0 : index
      %49 = vector.load %arg3[%c0_37, %c0_38, %c0_39] : memref<1x8x8xf32, #tpu.memory_space<vmem>>, vector<1x8x8xf32>
      %50 = vector.shape_cast %49 : vector<1x8x8xf32> to vector<8x8xf32>
      %cst_40 = arith.constant 5.000000e-01 : f32
      %51 = vector.broadcast %cst_40 : f32 to vector<8x8xf32>
      %52 = arith.cmpf ogt, %50, %51 : vector<8x8xf32>
      %cst_41 = arith.constant -1.000000e+09 : f32
      %cst_42 = arith.constant 0.000000e+00 : f32
      %53 = vector.broadcast %cst_41 : f32 to vector<8x8xf32>
      %54 = vector.broadcast %cst_42 : f32 to vector<8x8xf32>
      %55 = arith.select %52, %53, %54 : vector<8x8xi1>, vector<8x8xf32>
      %c0_43 = arith.constant 0 : index
      %c0_44 = arith.constant 0 : index
      %56 = vector.load %arg17[%c0_43, %c0_44] : memref<8x8xf32, #tpu.memory_space<vmem>>, vector<8x8xf32>
      tpu.vector_store %arg17[%c0_43, %c0_44], %55 {strides = array<i32>} : memref<8x8xf32, #tpu.memory_space<vmem>>, vector<8x8xf32>,
    } else {
    }
    %c0_3 = arith.constant 0 : index
    %c0_4 = arith.constant 0 : index
    %c0_5 = arith.constant 0 : index
    %6 = vector.load %arg4[%c0_3, %c0_4, %c0_5] : memref<1x32x16xbf16, #tpu.memory_space<vmem>>, vector<1x32x16xbf16>
    %7 = vector.shape_cast %6 : vector<1x32x16xbf16> to vector<32x16xbf16>
    %cst = arith.constant dense<0.000000e+00> : vector<8x16xf32>
    %8 = tpu.matmul %2, %7, %cst {dimension_numbers = #tpu.dot_dimension_numbers<[1], [0], [0], [1], [0, 0, 1, 1], [], []>} : vector<8x32xbf16>, vector<32x16xbf16>, vector<8x16xf32> -> vector<8x16xf32>
    %c0_6 = arith.constant 0 : index
    %c0_7 = arith.constant 0 : index
    %c0_8 = arith.constant 0 : index
    %9 = vector.load %arg5[%c0_6, %c0_7, %c0_8] : memref<1x32x16xbf16, #tpu.memory_space<vmem>>, vector<1x32x16xbf16>
    %10 = vector.shape_cast %9 : vector<1x32x16xbf16> to vector<32x16xbf16>
    %cst_9 = arith.constant dense<0.000000e+00> : vector<8x16xf32>
    %11 = tpu.matmul %2, %10, %cst_9 {dimension_numbers = #tpu.dot_dimension_numbers<[1], [0], [0], [1], [0, 0, 1, 1], [], []>} : vector<8x32xbf16>, vector<32x16xbf16>, vector<8x16xf32> -> vector<8x16xf32>
    %c0_10 = arith.constant 0 : index
    %c0_11 = arith.constant 0 : index
    %c0_12 = arith.constant 0 : index
    %12 = vector.load %arg6[%c0_10, %c0_11, %c0_12] : memref<1x32x16xbf16, #tpu.memory_space<vmem>>, vector<1x32x16xbf16>
    %13 = vector.shape_cast %12 : vector<1x32x16xbf16> to vector<32x16xbf16>
    %cst_13 = arith.constant dense<0.000000e+00> : vector<8x16xf32>
    %14 = tpu.matmul %2, %13, %cst_13 {dimension_numbers = #tpu.dot_dimension_numbers<[1], [0], [0], [1], [0, 0, 1, 1], [], []>} : vector<8x32xbf16>, vector<32x16xbf16>, vector<8x16xf32> -> vector<8x16xf32>
    %cst_14 = arith.constant 2.500000e-01 : f32
    %15 = vector.broadcast %cst_14 : f32 to vector<8x16xf32>
    %16 = arith.mulf %8, %15 : vector<8x16xf32>
    %17 = arith.truncf %16 : vector<8x16xf32> to vector<8x16xbf16>
    %18 = arith.truncf %11 : vector<8x16xf32> to vector<8x16xbf16>
    %cst_15 = arith.constant dense<0.000000e+00> : vector<8x8xf32>
    %19 = tpu.matmul %17, %18, %cst_15 {dimension_numbers = #tpu.dot_dimension_numbers<[1], [1], [0], [0], [0, 0, 1, 0], [], []>} : vector<8x16xbf16>, vector<8x16xbf16>, vector<8x8xf32> -> vector<8x8xf32>
    %c0_16 = arith.constant 0 : index
    %c0_17 = arith.constant 0 : index
    %20 = vector.load %arg17[%c0_16, %c0_17] : memref<8x8xf32, #tpu.memory_space<vmem>>, vector<8x8xf32>
    %21 = arith.addf %19, %20 : vector<8x8xf32>
    %cst_18 = arith.constant dense<0xFF800000> : vector<8xf32>
    %22 = vector.multi_reduction <maximumf>, %21, %cst_18 [1] : vector<8x8xf32> to vector<8xf32>
    %23 = vector.shape_cast %22 : vector<8xf32> to vector<8x1xf32>
    %24 = vector.broadcast %23 : vector<8x1xf32> to vector<8x8xf32>
    %25 = arith.subf %21, %24 : vector<8x8xf32>
    %26 = math.exp %25 : vector<8x8xf32>
    %cst_19 = arith.constant dense<0.000000e+00> : vector<8xf32>
    %27 = vector.multi_reduction <add>, %26, %cst_19 [1] : vector<8x8xf32> to vector<8xf32>
    %28 = vector.shape_cast %27 : vector<8xf32> to vector<8x1xf32>
    %29 = vector.broadcast %28 : vector<8x1xf32> to vector<8x8xf32>
    %30 = arith.divf %26, %29 : vector<8x8xf32>
    %c0_20 = arith.constant 0 : index
    %c0_21 = arith.constant 0 : index
    %c0_22 = arith.constant 0 : index
    %c0_23 = arith.constant 0 : index
    %31 = vector.load %arg15[%c0_20, %c0_21, %c0_22, %c0_23] : memref<1x1x8x8xf32, #tpu.memory_space<vmem>>, vector<1x1x8x8xf32>
    %32 = vector.shape_cast %31 : vector<1x1x8x8xf32> to vector<8x8xf32>
    %33 = vector.shape_cast %30 : vector<8x8xf32> to vector<1x1x8x8xf32>
    tpu.vector_store %arg15[%c0_20, %c0_21, %c0_22, %c0_23], %33 {strides = array<i32>} : memref<1x1x8x8xf32, #tpu.memory_space<vmem>>, vector<1x1x8x8xf32>,
    %34 = arith.truncf %30 : vector<8x8xf32> to vector<8x8xbf16>
    %35 = arith.truncf %14 : vector<8x16xf32> to vector<8x16xbf16>
    %cst_24 = arith.constant dense<0.000000e+00> : vector<8x16xf32>
    %36 = tpu.matmul %34, %35, %cst_24 {dimension_numbers = #tpu.dot_dimension_numbers<[1], [0], [0], [1], [0, 0, 1, 1], [], []>} : vector<8x8xbf16>, vector<8x16xbf16>, vector<8x16xf32> -> vector<8x16xf32>
    %c0_25 = arith.constant 0 : index
    %c0_26 = arith.constant 0 : index
    %37 = vector.load %arg16[%c0_25, %c0_26] : memref<8x32xf32, #tpu.memory_space<vmem>>, vector<8x32xf32>
    %38 = arith.truncf %36 : vector<8x16xf32> to vector<8x16xbf16>
    %c0_27 = arith.constant 0 : index
    %c0_28 = arith.constant 0 : index
    %c0_29 = arith.constant 0 : index
    %39 = vector.load %arg7[%c0_27, %c0_28, %c0_29] : memref<1x16x32xbf16, #tpu.memory_space<vmem>>, vector<1x16x32xbf16>
    %40 = vector.shape_cast %39 : vector<1x16x32xbf16> to vector<16x32xbf16>
    %cst_30 = arith.constant dense<0.000000e+00> : vector<8x32xf32>
    %41 = tpu.matmul %38, %40, %cst_30 {dimension_numbers = #tpu.dot_dimension_numbers<[1], [0], [0], [1], [0, 0, 1, 1], [], []>} : vector<8x16xbf16>, vector<16x32xbf16>, vector<8x32xf32> -> vector<8x32xf32>
    %42 = arith.addf %37, %41 : vector<8x32xf32>
    %c0_31 = arith.constant 0 : index
    %c0_32 = arith.constant 0 : index
    %43 = vector.load %arg16[%c0_31, %c0_32] : memref<8x32xf32, #tpu.memory_space<vmem>>, vector<8x32xf32>
    tpu.vector_store %arg16[%c0_31, %c0_32], %42 {strides = array<i32>} : memref<8x32xf32, #tpu.memory_space<vmem>>, vector<8x32xf32>,
    %c3_i32 = arith.constant 3 : i32
    %44 = arith.cmpi eq, %arg1, %c3_i32 : i32
    %45 = arith.extui %44 : i1 to i32
    %c0_i32_33 = arith.constant 0 : i32
    %46 = arith.cmpi ne, %45, %c0_i32_33 : i32
    scf.if %46 {
      %c0_34 = arith.constant 0 : index
      %c0_35 = arith.constant 0 : index
      %47 = vector.load %arg16[%c0_34, %c0_35] : memref<8x32xf32, #tpu.memory_space<vmem>>, vector<8x32xf32>
      %48 = arith.addf %47, %1 : vector<8x32xf32>
      %cst_36 = arith.constant dense<0.000000e+00> : vector<8xf32>
      %49 = vector.multi_reduction <add>, %48, %cst_36 [1] : vector<8x32xf32> to vector<8xf32>
      %50 = vector.shape_cast %49 : vector<8xf32> to vector<8x1xf32>
      %cst_37 = arith.constant 3.200000e+01 : f32
      %51 = vector.broadcast %cst_37 : f32 to vector<8x1xf32>
      %52 = arith.divf %50, %51 : vector<8x1xf32>
      %53 = vector.broadcast %52 : vector<8x1xf32> to vector<8x32xf32>
      %54 = arith.subf %48, %53 : vector<8x32xf32>
      %55 = arith.mulf %54, %54 : vector<8x32xf32>
      %cst_38 = arith.constant dense<0.000000e+00> : vector<8xf32>
      %56 = vector.multi_reduction <add>, %55, %cst_38 [1] : vector<8x32xf32> to vector<8xf32>
      %57 = vector.shape_cast %56 : vector<8xf32> to vector<8x1xf32>
      %cst_39 = arith.constant 3.200000e+01 : f32
      %58 = vector.broadcast %cst_39 : f32 to vector<8x1xf32>
      %59 = arith.divf %57, %58 : vector<8x1xf32>
      %60 = vector.broadcast %52 : vector<8x1xf32> to vector<8x32xf32>
      %61 = arith.subf %48, %60 : vector<8x32xf32>
      %cst_40 = arith.constant 9.99999974E-6 : f32
      %62 = vector.broadcast %cst_40 : f32 to vector<8x1xf32>
      %63 = arith.addf %59, %62 : vector<8x1xf32>
      %64 = math.rsqrt %63 : vector<8x1xf32>
      %65 = vector.broadcast %64 : vector<8x1xf32> to vector<8x32xf32>
      %66 = arith.mulf %61, %65 : vector<8x32xf32>
      %c0_41 = arith.constant 0 : index
      %c0_42 = arith.constant 0 : index
      %67 = vector.load %arg8[%c0_41, %c0_42] : memref<1x32xf32, #tpu.memory_space<vmem>>, vector<1x32xf32>
      %68 = vector.broadcast %67 : vector<1x32xf32> to vector<8x32xf32>
      %69 = arith.mulf %66, %68 : vector<8x32xf32>
      %c0_43 = arith.constant 0 : index
      %c0_44 = arith.constant 0 : index
      %70 = vector.load %arg9[%c0_43, %c0_44] : memref<1x32xf32, #tpu.memory_space<vmem>>, vector<1x32xf32>
      %71 = vector.broadcast %70 : vector<1x32xf32> to vector<8x32xf32>
      %72 = arith.addf %69, %71 : vector<8x32xf32>
      %73 = arith.truncf %72 : vector<8x32xf32> to vector<8x32xbf16>
      %c0_45 = arith.constant 0 : index
      %c0_46 = arith.constant 0 : index
      %74 = vector.load %arg10[%c0_45, %c0_46] : memref<32x64xbf16, #tpu.memory_space<vmem>>, vector<32x64xbf16>
      %cst_47 = arith.constant dense<0.000000e+00> : vector<8x64xf32>
      %75 = tpu.matmul %73, %74, %cst_47 {dimension_numbers = #tpu.dot_dimension_numbers<[1], [0], [0], [1], [0, 0, 1, 1], [], []>} : vector<8x32xbf16>, vector<32x64xbf16>, vector<8x64xf32> -> vector<8x64xf32>
      %cst_48 = arith.constant 0.000000e+00 : f32
      %76 = vector.broadcast %cst_48 : f32 to vector<8x64xf32>
      %77 = arith.maximumf %75, %76 : vector<8x64xf32>
      %78 = arith.truncf %77 : vector<8x64xf32> to vector<8x64xbf16>
      %c0_49 = arith.constant 0 : index
      %c0_50 = arith.constant 0 : index
      %79 = vector.load %arg11[%c0_49, %c0_50] : memref<64x32xbf16, #tpu.memory_space<vmem>>, vector<64x32xbf16>
      %cst_51 = arith.constant dense<0.000000e+00> : vector<8x32xf32>
      %80 = tpu.matmul %78, %79, %cst_51 {dimension_numbers = #tpu.dot_dimension_numbers<[1], [0], [0], [1], [0, 0, 1, 1], [], []>} : vector<8x64xbf16>, vector<64x32xbf16>, vector<8x32xf32> -> vector<8x32xf32>
      %81 = arith.addf %80, %72 : vector<8x32xf32>
      %cst_52 = arith.constant dense<0.000000e+00> : vector<8xf32>
      %82 = vector.multi_reduction <add>, %81, %cst_52 [1] : vector<8x32xf32> to vector<8xf32>
      %83 = vector.shape_cast %82 : vector<8xf32> to vector<8x1xf32>
      %cst_53 = arith.constant 3.200000e+01 : f32
      %84 = vector.broadcast %cst_53 : f32 to vector<8x1xf32>
      %85 = arith.divf %83, %84 : vector<8x1xf32>
      %86 = vector.broadcast %85 : vector<8x1xf32> to vector<8x32xf32>
      %87 = arith.subf %81, %86 : vector<8x32xf32>
      %88 = arith.mulf %87, %87 : vector<8x32xf32>
      %cst_54 = arith.constant dense<0.000000e+00> : vector<8xf32>
      %89 = vector.multi_reduction <add>, %88, %cst_54 [1] : vector<8x32xf32> to vector<8xf32>
      %90 = vector.shape_cast %89 : vector<8xf32> to vector<8x1xf32>
      %cst_55 = arith.constant 3.200000e+01 : f32
      %91 = vector.broadcast %cst_55 : f32 to vector<8x1xf32>
      %92 = arith.divf %90, %91 : vector<8x1xf32>
      %93 = vector.broadcast %85 : vector<8x1xf32> to vector<8x32xf32>
      %94 = arith.subf %81, %93 : vector<8x32xf32>
      %cst_56 = arith.constant 9.99999974E-6 : f32
      %95 = vector.broadcast %cst_56 : f32 to vector<8x1xf32>
      %96 = arith.addf %92, %95 : vector<8x1xf32>
      %97 = math.rsqrt %96 : vector<8x1xf32>
      %98 = vector.broadcast %97 : vector<8x1xf32> to vector<8x32xf32>
      %99 = arith.mulf %94, %98 : vector<8x32xf32>
      %c0_57 = arith.constant 0 : index
      %c0_58 = arith.constant 0 : index
      %100 = vector.load %arg12[%c0_57, %c0_58] : memref<1x32xf32, #tpu.memory_space<vmem>>, vector<1x32xf32>
      %101 = vector.broadcast %100 : vector<1x32xf32> to vector<8x32xf32>
      %102 = arith.mulf %99, %101 : vector<8x32xf32>
      %c0_59 = arith.constant 0 : index
      %c0_60 = arith.constant 0 : index
      %103 = vector.load %arg13[%c0_59, %c0_60] : memref<1x32xf32, #tpu.memory_space<vmem>>, vector<1x32xf32>
      %104 = vector.broadcast %103 : vector<1x32xf32> to vector<8x32xf32>
      %105 = arith.addf %102, %104 : vector<8x32xf32>
      %c0_61 = arith.constant 0 : index
      %c0_62 = arith.constant 0 : index
      %c0_63 = arith.constant 0 : index
      %106 = vector.load %arg14[%c0_61, %c0_62, %c0_63] : memref<1x8x32xf32, #tpu.memory_space<vmem>>, vector<1x8x32xf32>
      %107 = vector.shape_cast %106 : vector<1x8x32xf32> to vector<8x32xf32>
      %108 = vector.shape_cast %105 : vector<8x32xf32> to vector<1x8x32xf32>
      tpu.vector_store %arg14[%c0_61, %c0_62, %c0_63], %108 {strides = array<i32>} : memref<1x8x32xf32, #tpu.memory_space<vmem>>, vector<1x8x32xf32>,
    } else {
    }
    return
  }
  func.func @transform_0(%arg0: i32, %arg1: i32) -> (i32, i32, i32) {
    %c0_i32 = arith.constant 0 : i32
    %c0_i32_0 = arith.constant 0 : i32
    %c0_i32_1 = arith.constant 0 : i32
    return %arg0, %c0_i32, %c0_i32_0 : i32, i32, i32
  }
  func.func @transform_1(%arg0: i32, %arg1: i32) -> (i32, i32, i32) {
    %c0_i32 = arith.constant 0 : i32
    %c0_i32_0 = arith.constant 0 : i32
    %c0_i32_1 = arith.constant 0 : i32
    return %arg0, %c0_i32, %c0_i32_0 : i32, i32, i32
  }
  func.func @transform_2(%arg0: i32, %arg1: i32) -> (i32, i32, i32) {
    %c0_i32 = arith.constant 0 : i32
    %c0_i32_0 = arith.constant 0 : i32
    %c0_i32_1 = arith.constant 0 : i32
    return %arg1, %c0_i32, %c0_i32_0 : i32, i32, i32
  }
  func.func @transform_3(%arg0: i32, %arg1: i32) -> (i32, i32, i32) {
    %c0_i32 = arith.constant 0 : i32
    %c0_i32_0 = arith.constant 0 : i32
    %c0_i32_1 = arith.constant 0 : i32
    return %arg1, %c0_i32, %c0_i32_0 : i32, i32, i32
  }
  func.func @transform_4(%arg0: i32, %arg1: i32) -> (i32, i32, i32) {
    %c0_i32 = arith.constant 0 : i32
    %c0_i32_0 = arith.constant 0 : i32
    %c0_i32_1 = arith.constant 0 : i32
    return %arg1, %c0_i32, %c0_i32_0 : i32, i32, i32
  }
  func.func @transform_5(%arg0: i32, %arg1: i32) -> (i32, i32, i32) {
    %c0_i32 = arith.constant 0 : i32
    %c0_i32_0 = arith.constant 0 : i32
    %c0_i32_1 = arith.constant 0 : i32
    return %arg1, %c0_i32, %c0_i32_0 : i32, i32, i32
  }
  func.func @transform_6(%arg0: i32, %arg1: i32) -> (i32, i32) {
    %c0_i32 = arith.constant 0 : i32
    %c0_i32_0 = arith.constant 0 : i32
    %c0_i32_1 = arith.constant 0 : i32
    return %c0_i32, %c0_i32_0 : i32, i32
  }
  func.func @transform_7(%arg0: i32, %arg1: i32) -> (i32, i32) {
    %c0_i32 = arith.constant 0 : i32
    %c0_i32_0 = arith.constant 0 : i32
    %c0_i32_1 = arith.constant 0 : i32
    return %c0_i32, %c0_i32_0 : i32, i32
  }
  func.func @transform_8(%arg0: i32, %arg1: i32) -> (i32, i32) {
    %c0_i32 = arith.constant 0 : i32
    %c0_i32_0 = arith.constant 0 : i32
    %c0_i32_1 = arith.constant 0 : i32
    return %c0_i32, %c0_i32_0 : i32, i32
  }
  func.func @transform_9(%arg0: i32, %arg1: i32) -> (i32, i32) {
    %c0_i32 = arith.constant 0 : i32
    %c0_i32_0 = arith.constant 0 : i32
    %c0_i32_1 = arith.constant 0 : i32
    return %c0_i32, %c0_i32_0 : i32, i32
  }
  func.func @transform_10(%arg0: i32, %arg1: i32) -> (i32, i32) {
    %c0_i32 = arith.constant 0 : i32
    %c0_i32_0 = arith.constant 0 : i32
    %c0_i32_1 = arith.constant 0 : i32
    return %c0_i32, %c0_i32_0 : i32, i32
  }
  func.func @transform_11(%arg0: i32, %arg1: i32) -> (i32, i32) {
    %c0_i32 = arith.constant 0 : i32
    %c0_i32_0 = arith.constant 0 : i32
    %c0_i32_1 = arith.constant 0 : i32
    return %c0_i32, %c0_i32_0 : i32, i32
  }
  func.func @transform_12(%arg0: i32, %arg1: i32) -> (i32, i32, i32) {
    %c0_i32 = arith.constant 0 : i32
    %c0_i32_0 = arith.constant 0 : i32
    %c0_i32_1 = arith.constant 0 : i32
    return %arg0, %c0_i32, %c0_i32_0 : i32, i32, i32
  }
  func.func @transform_13(%arg0: i32, %arg1: i32) -> (i32, i32, i32, i32) {
    %c0_i32 = arith.constant 0 : i32
    %c0_i32_0 = arith.constant 0 : i32
    %c0_i32_1 = arith.constant 0 : i32
    return %arg0, %arg1, %c0_i32, %c0_i32_0 : i32, i32, i32, i32
  }
}

</mosaic_0001>

<bundles_post_ra>
// kernel: tpu_custom_call.1
= control target key start
LH: loop header
LB: loop body
LE: loop exit
PB: predicated region body
PF: predicated region fallthrough
CT: control target
= control target key end

     0   :  { %s1864_s0 = inlined_call_operand.vmem [shape: f32[2,8,32], index: 0, kind: input, shape index: {}]   ;;  %s1865_s1 = inlined_call_operand.vmem [shape: f32[2,8,8], index: 1, kind: input, shape index: {}]   ;;  %s1866_s2 = inlined_call_operand.vmem [shape: bf16[4,32,16], index: 2, kind: input, shape index: {}]   ;;  %s1867_s3 = inlined_call_operand.vmem [shape: bf16[4,32,16], index: 3, kind: input, shape index: {}]   ;;  %s1868_s4 = inlined_call_operand.vmem [shape: bf16[4,32,16], index: 4, kind: input, shape index: {}]   ;;  %s1869_s5 = inlined_call_operand.vmem [shape: bf16[4,16,32], index: 5, kind: input, shape index: {}]   ;;  %s1870_s6 = inlined_call_operand.vmem [shape: f32[1,32], index: 6, kind: input, shape index: {}]   ;;  %s1871_s7 = inlined_call_operand.vmem [shape: f32[1,32], index: 7, kind: input, shape index: {}]   ;;  %s1872_s8 = inlined_call_operand.vmem [shape: bf16[32,64], index: 8, kind: input, shape index: {}]   ;;  %s1873_s9 = inlined_call_operand.vmem [shape: bf16[64,32], index: 9, kind: input, shape index: {}]   ;;  %s1874_s10 = inlined_call_operand.vmem [shape: f32[1,32], index: 10, kind: input, shape index: {}]   ;;  %s1875_s11 = inlined_call_operand.vmem [shape: f32[1,32], index: 11, kind: input, shape index: {}]   ;;  %s1876_s12 = inlined_call_operand.hbm [shape: f32[2,8,32], index: 12, kind: output, shape index: {0}]   ;;  %s1877_s13 = inlined_call_operand.hbm [shape: f32[2,4,8,8], index: 13, kind: output, shape index: {1}]  }
   0x1   :  { %1899 = sst [smem:[#allocation25_spill]] %s1864_s0 }
   0x2   :  { %1900 = sst [smem:[#allocation26_spill]] %s1865_s1 }
   0x3   :  { %1901 = sst [smem:[#allocation27_spill]] %s1871_s7 }
   0x4   :  { %1902 = sst [smem:[#allocation28_spill]] %s1874_s10 }
   0x5   :  { %1903 = sst [smem:[#allocation29_spill]] %s1875_s11 }
   0x6   :  { %1904 = sst [smem:[#allocation30_spill]] %s1876_s12 }
   0x7   :  { %1905 = sst [smem:[#allocation31_spill]] %s1877_s13 }
   0x8   :  { %19 = vsyncpa [#allocation5], 0 }
   0x9   :  { %21 = vsyncpa [#allocation5 + $0x1], 0 }
   0xa   :  { %22 = vsyncpa [#allocation7], 0 }
   0xb   :  { %24 = vsyncpa [#allocation7 + $0x1], 0  ;;  %s1570_s25 = smov 0   ;;  %s1572_s26 = smov 0  }
   0xc   :  { %s1574_s27 = smov 0   ;;  %s1576_s28 = smov 0  }
   0xd   :  { %s1578_s29 = smov 0   ;;  %s1580_s30 = smov 0  }
   0xe   :  { %s1582_s14 = smov 0   ;;  %s1584_s15 = smov 0  }
   0xf   :  { %s1586_s16 = smov 0   ;;  %s1588_s17 = smov 0  }
  0x10   :  { %s1590_s18 = smov 0  }
  0x11 LB: > { %1906 = sst [smem:[#allocation10_spill]] %s1456_s25  ;;  %s1127_s19 = sadd.s32 4294967295, %s1496_s18   ;;  %s1496_s18 = sphi %s1590_s18, %s30_s18   ;;  %s1492_s17 = sphi %s1588_s17, %s1951_s17   ;;  %s1488_s16 = sphi %s1586_s16, %s1956_s16   ;;  %s1484_s15 = sphi %s1584_s15, %s1949_s15   ;;  %s1480_s14 = sphi %s1582_s14, %s1948_s14   ;;  %s1476_s30 = sphi %s1580_s30, %s1947_s30   ;;  %s1472_s29 = sphi %s1578_s29, %s1955_s29   ;;  %s1468_s28 = sphi %s1576_s28, %s1954_s28   ;;  %s1464_s27 = sphi %s1574_s27, %s1945_s27   ;;  %s1460_s26 = sphi %s1572_s26, %s1953_s26   ;;  %s1456_s25 = sphi %s1570_s25, %s1952_s25  }
  0x12   : > { %1907 = sst [smem:[#allocation11_spill]] %s1464_s27  ;;  %s1128_s20 = sadd.s32 4294967294, %s1496_s18  }
  0x13   : > { %1908 = sst [smem:[#allocation12_spill]] %s1468_s28  ;;  %s39_s21 = sadd.s32 1, %s1488_s16 }
  0x14   : > { %1909 = sst [smem:[#allocation13_spill]] %s1476_s30  ;;  %s42_s22 = sadd.s32 1, %s1492_s17 }
  0x15   : > { %1910 = sst [smem:[#allocation14_spill]] %s1488_s16  ;;  %p40_p0 = scmp.ge.s32.totalorder %s39_s21, 4 }
  0x16   : > { %1911 = sst [smem:[#allocation15_spill]] %s1492_s17  ;;  %s331_s23 = sadd.s32 1, %s1476_s30 }
  0x17   : > { %1912 = sst [smem:[#allocation16_spill]] %s1496_s18  ;;  %p341_p1 = scmp.ne.s32.totalorder %s1476_s30, %s1472_s29 }
  0x18   : > { %p1632_p2 = scmp.eq.s32.totalorder %s1127_s19, 7  ;;  %s1958_s21 = smov (%p40_p0, %s39_s21), 0 }
  0x19   : > { %1914 = sst [smem:[#allocation17_spill]] %s1958_s21  ;;  %s1960_s22 = smov (!%p40_p0, %s42_s22), %s1492_s17 }
  0x1a   : > { %p1641_p3 = por %p1632_p2, %p341_p1  ;;  %p347_p4 = scmp.ne.s32.totalorder %s1472_s29, %s1468_s28 }
  0x1b   : > { %p44_p5 = scmp.ge.s32.totalorder %s1960_s22, 2  ;;  %p1647_p6 = scmp.eq.s32.totalorder %s1128_s20, 7 }
  0x1c   : > { %s1915_s13 = scalar_select %p1641_p3, 1, 0 }
  0x1d   : > { %s355_s12 = ssub.s32 %s1488_s16, %s1958_s21  ;;  %s359_s11 = sadd.s32 1, %s1464_s27 }
  0x1e   : > { %1916 = sst [smem:[#allocation18_spill]] %s1915_s13  ;;  %s1962_s22 = smov (%p44_p5, %s1960_s22), 0 }
  0x1f   : > { %1918 = sst [smem:[#allocation19_spill]] %s1962_s22  ;;  %p1658_p7 = por %p1647_p6, %p347_p4 }
  0x20   : > { %p369_p8 = scmp.ne.s32.totalorder %s1464_s27, %s1460_s26  ;;  %s328_s28 = ssub.s32 %s1492_s17, %s1962_s22 }
  0x21   : > { %s1919_s10 = scalar_select %p1658_p7, 1, 0 }
  0x22   : > { %p375_p9 = scmp.ne.s32.totalorder %s1460_s26, %s1456_s25  ;;  %p329_p10 = scmp.eq.s32.totalorder %s328_s28, 0 }
  0x23   : > { %1920 = sst [smem:[#allocation20_spill]] %s1919_s10  ;;  %s356_s20 = sor.u32 %s355_s12, %s328_s28 }
  0x24   : > { %p357_p11 = scmp.eq.s32.totalorder %s356_s20, 0  ;;  %p1670_p12 = por %p369_p8, %p1632_p2 }
  0x25   : > { %s1675_s21 = scalar_select %p329_p10, %s1476_s30, %s331_s23  }
  0x26   : > { %s1921_s13 = scalar_select %p1670_p12, 1, 0 }
  0x27   : > { %1923 = sst [smem:[#allocation22_spill]] %s1675_s21  ;;  %p1682_p13 = por %p375_p9, %p1647_p6 }
  0x28   : > { %1922 = sst [smem:[#allocation21_spill]] %s1921_s13  ;;  %p1131_p0 = scmp.ge.s32.totalorder %s1496_s18, 1 }
  0x29   : > { %s1678_s16 = scalar_select %p357_p11, %s1464_s27, %s359_s11  }
  0x2a   : > { %s1925_s7 = scalar_select %p1682_p13, 1, 0 }
  0x2b   : > { %1924 = sst [smem:[#allocation23_spill]] %s1678_s16  ;;  %p458_p1 = scmp.lt.s32.totalorder %s1496_s18, 9 }
  0x2c   : > { %1926 = sst [smem:[#allocation24_spill]] %s1925_s7 }
  0x2d   : > { %p459_p4 = pnand %p1131_p0, %p458_p1 }
  0x2e   : > { %s1889_s12 = sand.u32 (!%p459_p4), 1, %s1472_s29   ;;  %s1891_s11 = sand.u32 (!%p459_p4), 1, %s1460_s26  }
  0x2f   : > { %462 = sbr.rel (%p459_p4) target bundleno = 1718 (0x6b6), region = 68  ;;  %s1692_s28 = sshll.u32 (!%p459_p4), %s1889_s12, 3 }
  0x30   : > { %s1696_s23 = sshll.u32 (!%p459_p4), %s1891_s11, 3  ;;  %p530_p2 = scmp.lt.s32.totalorder (!%p459_p4), %s1484_s15, 1 }
  0x31   : > { %p538_p5 = scmp.lt.s32.totalorder (!%p459_p4), %s1480_s14, 3  ;;  %s1927_s0 = sld [smem:[#allocation25_spill]] (!%p459_p4) }
  0x32   : > { %s1928_s1 = sld [smem:[#allocation26_spill]] (!%p459_p4)  ;;  %s1898_s25 = scalar_lea.vmem (!%p459_p4), [#allocation6], %s1696_s23 }
  0x33   : > { %p1144_p6 = scmp.ne.s32.totalorder (!%p459_p4), %s1480_s14, 0 }
  0x34   : > { %s531_s24 = scalar_select %p530_p2, %s1484_s15, 1 }
  0x35   : > { %s539_s19 = scalar_select %p538_p5, %s1480_s14, 3 }
  0x36   : > { %s1134_s20 = sshll.u32 %s531_s24, 3 }
  0x37   : > { %s533_s21 = scalar_lea.vmem %s1927_s0, %s1134_s20  ;;  %s1213_s12 = sshll.u32 %s539_s19, 4 }
  0x38   : > { %s537_s27 = scalar_lea.vmem %s1928_s1, %s1134_s20  ;;  %s1216_s7 = sshll.u32 %s539_s19, 3  ;;  %v1708_v0 = vld [vmem:[%s533_s21] sm:$0xff] }
  0x39   : > { %s542_s10 = scalar_lea.vmem %s1866_s2, %s1213_s12  ;;  %s547_s24 = scalar_lea.vmem %s1867_s3, %s1213_s12  ;;  %v560_v1 = vpack.c.bf16 %v1708_v0, %v1708_v0 }
  0x3a   : > { %s1721_s30 = scalar_lea.vmem %s1868_s4, %s1213_s12  ;;  %s1726_s21 = scalar_lea.vmem %s1869_s5, %s1216_s7 }
  0x3b   : > { %s522_s20 = scalar_lea.vmem [#allocation4], %s1692_s28  ;;  %564 = sbr.rel (%p1144_p6) target bundleno = 68 (0x44), region = 72 }
  0x40   : > { %vm565_vm0 = vcmask 261120   ;;  %v567_v2 = vld [vmem:[%s537_s27] sm:$0xff]  ;;  %vm570_vm1 = vcmask 64512   ;;  %v1498_v3 = vmov 0.0  }
  0x41   : > { %566 = vst.msk [vmem:[#allocation2] sm:$0xff] %vm565_vm0, %v1498_v3  ;;  %vm568_vm2 = vcmp.gt.f32.partialorder %v567_v2, 0.5 }
  0x42   : > { %v569_v4 = vsel %vm568_vm2, -1e+09, %v1498_v3 }
  0x43   : > { %571 = vst.msk [vmem:[#allocation3] sm:$0xff] %vm570_vm1, %v569_v4 }
  0x44 PF: > { %v1218_v5 = vld [vmem:[%s542_s10 + $0x8] sm:$0xff]  ;;  %v1217_v7 = vld [vmem:[%s542_s10] sm:$0xff]  ;;  %vm588_vm3 = vcmask 261120   ;;  %vm667_vm4 = vcmask 130048   ;;  %vm687_vm5 = vcmask 64512   ;;  %vm718_vm6 = vcmask 1043456  }
  0x45   : > { %v1220_v6 = vld [vmem:[%s547_s24 + $0x8] sm:$0xff]  ;;  %598 = vmatpush.bf16.msra.mxu0 %v1218_v5  ;;  %v1219_v8 = vld [vmem:[%s547_s24] sm:$0xff]  ;;  %p1179_p8 = scmp.ne.s32.totalorder %s1480_s14, 3 }
  0x46   : > { %627 = vmatpush.bf16.msra.mxu1 %v1220_v6  ;;  %v1222_v17 = vld [vmem:[%s1721_s30 + $0x8] sm:$0xff]  ;;  %v1221_v18 = vld [vmem:[%s1721_s30] sm:$0xff]  ;;  %s1929_s7 = sld [smem:[#allocation27_spill]] (!%p1179_p8) }
  0x47   : > { %656 = vmatpush.bf16.msra.mxu2 %v1222_v17  ;;  %v1223_v33 = vld [vmem:[%s1726_s21] sm:$0xff]  ;;  %s1930_s12 = sld [smem:[#allocation28_spill]] (!%p1179_p8) }
  0x48   : > { %v735_v50 = vld [vmem:[#allocation2] sm:$0xff]  ;;  %s1931_s17 = sld [smem:[#allocation29_spill]] (!%p1179_p8) }
  0x49   : > { %599 = vmatpush.bf16.msra.mxu0 %v1217_v7 }
  0x4a   : > { %628 = vmatpush.bf16.msra.mxu1 %v1219_v8  ;;  %v666_v19 = vld [vmem:[#allocation3] sm:$0xff] }
  0x4b   : > { %657 = vmatpush.bf16.msra.mxu2 %v1221_v18 }
  0x4c   : > { %1153 = vmatmul.msk.bf16.vlgmr.msra.gmra.mxu0 %vm588_vm3, %v560_v1 }
  0x4d   : > { %1162 = vmatmul.msk.bf16.vlgmr.msra.gmra.mxu1 %vm588_vm3, %v560_v1 }
  0x4e   : > { %1171 = vmatmul.msk.bf16.vlgmr.msra.gmra.mxu2 %vm588_vm3, %v560_v1  ;;  %755 = vmatpush.bf16.msrb.mxu1 %v1223_v33 }
  0xc9   : > { %v601_v9 = vpop.f32.mrf.mxu0 }
  0xca   : > { %v630_v10 = vpop.f32.mrf.mxu1  ;;  %v663_v12 = vmul.f32 0.25, %v601_v9 }
  0xcb   : > { %v665_v11 = vpack.c.bf16 %v630_v10, %v630_v10 }
  0xcc   : > { %v664_v14 = vpack.c.bf16 %v663_v12, %v663_v12 }
  0xcd   : > { %v672_v13 = vsel %vm667_vm4, %v665_v11, 0 }
  0xce   : > { %681 = vmatpush.bf16.xpose.msra.mxu3 %v672_v13 }
  0xd1   : > { %v603_v15 = vpop.f32.mrf.mxu0  ;;  %v659_v24 = vpop.f32.mrf.mxu2 }
  0xd2   : > { %v632_v16 = vpop.f32.mrf.mxu1  ;;  %v714_v31 = vpack.c.bf16 %v659_v24, %v659_v24 }
  0xd4   : > { %v720_v32 = vsel %vm718_vm6, %v714_v31, 0 }
  0xd5   : > { %1172 = vmatmul.msk.bf16.vlgmr.msra.gmra.mxu3 %vm667_vm4, %v664_v14  ;;  %729 = vmatpush.bf16.msrb.mxu0 %v720_v32 }
  0xd9   : > { %v661_v28 = vpop.f32.mrf.mxu2 }
 0x158   : > { %v683_v20 = vpop.f32.mrf.mxu3 }
 0x159   : > { %v684_v21 = vadd.f32 %v683_v20, %v666_v19 }
 0x15b   : > { %v688_v22 = vsel %vm687_vm5, %v684_v21, -inf }
 0x15c   : > { %689 = vmax.xlane.f32.xlu0 %v688_v22 }
 0x160   : > { %v685_v23 = vpop.f32.mrf.mxu3 }
 0x1cf   : > { %v690_v25 = vpop.xlane.xlu0 %689 }
 0x1d0   : > { %v691_v26 = vsub.f32 %v684_v21, %v690_v25 }
 0x1d2   : > { %v692_v27 = vmul.f32 1.442695, %v691_v26 }
 0x1d4   : > { %1332 = vpow2.f32 %v692_v27 }
 0x1da   : > { %v1333_v29 = vpop.eup %1332 }
 0x1db   : > { %v694_v30 = vsel %vm687_vm5, %v1333_v29, 0.0 }
 0x1dc   : > { %695 = vadd.xlane.f32.xlu0 %v694_v30 }
 0x24f   : > { %v696_v34 = vpop.xlane.xlu0 %695 }
 0x250   : > { %1334 = vrcp.f32 %v696_v34  ;;  %v708_v38 = vand.u32 2147483648, %v696_v34  ;;  %v706_v40 = vand.u32 2147483647, %v696_v34  ;;  %vm702_vm8 = vweird.f32 %v696_v34 }
 0x252   : > { %v709_v42 = vor.u32 1.1754944e-38, %v708_v38  ;;  %vm707_vm10 = vcmp.eq.f32.partialorder %v706_v40, 8.507059e+37 }
 0x256   : > { %v1335_v35 = vpop.eup %1334 }
 0x257   : > { %v698_v36 = vmul.f32 %v1335_v35, %v696_v34  ;;  %vm703_vm7 = vweird.f32 %v1335_v35 }
 0x258   : > { %vm704_vm9 = vmor %vm702_vm8, %vm703_vm7 }
 0x259   : > { %v699_v37 = vsub.f32 1.0, %v698_v36 }
 0x25b   : > { %v700_v39 = vmul.f32 %v1335_v35, %v699_v37 }
 0x25d   : > { %v701_v41 = vadd.f32 %v1335_v35, %v700_v39 }
 0x25f   : > { %v705_v43 = vsel %vm704_vm9, %v1335_v35, %v701_v41 }
 0x260   : > { %v710_v44 = vsel %vm707_vm10, %v709_v42, %v705_v43 }
 0x261   : > { %v711_v45 = vmul.f32 %v1333_v29, %v710_v44 }
 0x263   : > { %712 = vst.msk [vmem:[%s1898_s25] sm:$0xff] %vm687_vm5, %v711_v45  ;;  %v713_v46 = vpack.c.bf16 %v711_v45, %v711_v45 }
 0x265   : > { %1173 = vmatmul.msk.bf16.vlgmr.msrb.gmra.mxu0 %vm687_vm5, %v713_v46 }
 0x2e2   : > { %v731_v47 = vpop.f32.mrf.mxu0 }
 0x2e3   : > { %v736_v48 = vpack.c.bf16 %v731_v47, %v731_v47 }
 0x2e5   : > { %1178 = vmatmul.msk.bf16.vlgmr.msrb.gmra.mxu1 %vm667_vm4, %v736_v48 }
 0x2ea   : > { %v733_v49 = vpop.f32.mrf.mxu0 }
 0x362   : > { %v757_v51 = vpop.f32.mrf.mxu1 }
 0x363   : > { %v761_v52 = vadd.f32 %v757_v51, %v735_v50 }
 0x365   : > { %762 = vst.msk [vmem:[#allocation2] sm:$0xff] %vm588_vm3, %v761_v52 }
 0x366   : > { %766 = sbr.rel (%p1179_p8) target bundleno = 1676 (0x68c), region = 76 }
 0x36a   : > { %v759_v53 = vpop.f32.mrf.mxu1 }
 0x36b   : > { %v1499_v57 = vmov 32.0   ;;  %v1224_v6 = vld [vmem:[%s1872_s8] sm:$0xff]  ;;  %v1229_v7 = vld [vmem:[%s1873_s9 + $0x18] sm:$0xff]  ;;  %v1228_v10 = vld [vmem:[%s1873_s9 + $0x10] sm:$0xff]  ;;  %vm875_vm15 = vcmask 523264  }
 0x36c   : > { %v767_v54 = vld [vmem:[#allocation2] sm:$0xff]  ;;  %1340 = vrcp.f32 %v1499_v57  ;;  %883 = vmatpush.bf16.msra.mxu1 %v1229_v7  ;;  %v1227_v12 = vld [vmem:[%s1873_s9 + $0x8] sm:$0xff] }
 0x36d   : > { %v768_v55 = vadd.f32 %v767_v54, %v1708_v0  ;;  %v1225_v0 = vld [vmem:[%s1872_s8 + $0x8] sm:$0xff]  ;;  %v1336_v19 = vld [vmem:[%s1870_s6] ss:$0 sm:$0xff] }
 0x36e   : > { %834 = vmatpush.bf16.msra.mxu0 %v1225_v0  ;;  %v1337_v22 = vld [vmem:[%s1929_s7] ss:$0 sm:$0xff] }
 0x36f   : > { %v769_v56 = vsel %vm588_vm3, %v768_v55, 0.0  ;;  %v1226_v26 = vld [vmem:[%s1873_s9] sm:$0xff] }
 0x370   : > { %770 = vadd.xlane.f32.xlu0 %v769_v56  ;;  %884 = vmatpush.bf16.msra.mxu1 %v1228_v10  ;;  %v1338_v49 = vld [vmem:[%s1930_s12] ss:$0 sm:$0xff] }
 0x371   : > { %v1339_v51 = vld [vmem:[%s1931_s17] ss:$0 sm:$0xff] }
 0x372   : > { %v1341_v58 = vpop.eup %1340  ;;  %835 = vmatpush.bf16.msra.mxu0 %v1224_v6 }
 0x373   : > { %v773_v59 = vmul.f32 32.0, %v1341_v58  ;;  %vm777_vm11 = vweird.f32 %v1341_v58 }
 0x374   : > { %885 = vmatpush.bf16.msra.mxu1 %v1227_v12 }
 0x375   : > { %v774_v60 = vsub.f32 1.0, %v773_v59 }
 0x377   : > { %v775_v61 = vmul.f32 %v1341_v58, %v774_v60 }
 0x378   : > { %886 = vmatpush.bf16.msra.mxu1 %v1226_v26 }
 0x379   : > { %v776_v62 = vadd.f32 %v1341_v58, %v775_v61 }
 0x37b   : > { %v778_v63 = vsel %vm777_vm11, %v1341_v58, %v776_v62 }
 0x3e3   : > { %v771_v1 = vpop.xlane.xlu0 %770 }
 0x3e4   : > { %v779_v2 = vmul.f32 %v778_v63, %v771_v1 }
 0x3e6   : > { %v780_v3 = vsub.f32 %v768_v55, %v779_v2 }
 0x3e8   : > { %v781_v4 = vmul.f32 %v780_v3, %v780_v3 }
 0x3ea   : > { %v782_v5 = vsel %vm588_vm3, %v781_v4, 0.0 }
 0x3eb   : > { %783 = vadd.xlane.f32.xlu0 %v782_v5 }
 0x45e   : > { %v784_v8 = vpop.xlane.xlu0 %783 }
 0x45f   : > { %v785_v9 = vmul.f32 %v784_v8, %v778_v63 }
 0x461   : > { %v786_v11 = vadd.f32 1e-05, %v785_v9 }
 0x463   : > { %1342 = vrsqrt.f32 %v786_v11  ;;  %vm793_vm13 = vweird.f32 %v786_v11 }
 0x469   : > { %v1343_v13 = vpop.eup %1342 }
 0x46a   : > { %v788_v14 = vmul.f32 %v1343_v13, %v786_v11  ;;  %vm794_vm12 = vweird.f32 %v1343_v13 }
 0x46b   : > { %vm795_vm14 = vmor %vm793_vm13, %vm794_vm12 }
 0x46c   : > { %v789_v15 = vmul.f32 %v1343_v13, %v788_v14 }
 0x46e   : > { %v790_v16 = vmul.f32 0.5, %v789_v15 }
 0x470   : > { %v791_v17 = vsub.f32 1.5, %v790_v16 }
 0x472   : > { %v792_v18 = vmul.f32 %v1343_v13, %v791_v17 }
 0x474   : > { %v796_v20 = vsel %vm795_vm14, %v1343_v13, %v792_v18 }
 0x475   : > { %v797_v21 = vmul.f32 %v796_v20, %v780_v3 }
 0x477   : > { %v802_v23 = vmul.f32 %v1336_v19, %v797_v21 }
 0x479   : > { %v807_v24 = vadd.f32 %v1337_v22, %v802_v23 }
 0x47b   : > { %v808_v25 = vpack.c.bf16 %v807_v24, %v807_v24 }
 0x47d   : > { %1188 = vmatmul.msk.bf16.vlgmr.msra.gmra.mxu0 %vm588_vm3, %v808_v25 }
 0x4fa   : > { %v837_v27 = vpop.f32.mrf.mxu0 }
 0x4fb   : > { %v841_v28 = vmax.f32 %v837_v27, 0.0 }
 0x4fd   : > { %v842_v29 = vpack.c.bf16 %v841_v28, %v841_v28 }
 0x4ff   : > { %1205 = vmatmul.msk.bf16.vlgmr.msra.gmra.mxu1 %vm875_vm15, %v842_v29 }
 0x502   : > { %v839_v30 = vpop.f32.mrf.mxu0 }
 0x57c   : > { %v888_v31 = vpop.f32.mrf.mxu1 }
 0x57d   : > { %v889_v32 = vadd.f32 %v888_v31, %v807_v24 }
 0x57f   : > { %v892_v33 = vsel %vm588_vm3, %v889_v32, 0.0 }
 0x580   : > { %893 = vadd.xlane.f32.xlu1 %v892_v33 }
 0x584   : > { %v890_v34 = vpop.f32.mrf.mxu1 }
 0x5f3   : > { %v894_v35 = vpop.xlane.xlu1 %893 }
 0x5f4   : > { %v895_v36 = vmul.f32 %v894_v35, %v778_v63 }
 0x5f6   : > { %v896_v37 = vsub.f32 %v889_v32, %v895_v36 }
 0x5f8   : > { %v897_v38 = vmul.f32 %v896_v37, %v896_v37 }
 0x5fa   : > { %v898_v39 = vsel %vm588_vm3, %v897_v38, 0.0 }
 0x5fb   : > { %899 = vadd.xlane.f32.xlu1 %v898_v39 }
 0x66e   : > { %v900_v40 = vpop.xlane.xlu1 %899 }
 0x66f   : > { %v901_v41 = vmul.f32 %v900_v40, %v778_v63 }
 0x671   : > { %v902_v42 = vadd.f32 1e-05, %v901_v41 }
 0x673   : > { %1344 = vrsqrt.f32 %v902_v42  ;;  %vm909_vm1 = vweird.f32 %v902_v42 }
 0x679   : > { %v1345_v43 = vpop.eup %1344 }
 0x67a   : > { %v904_v44 = vmul.f32 %v1345_v43, %v902_v42  ;;  %vm910_vm0 = vweird.f32 %v1345_v43 }
 0x67b   : > { %vm911_vm2 = vmor %vm909_vm1, %vm910_vm0 }
 0x67c   : > { %v905_v45 = vmul.f32 %v1345_v43, %v904_v44 }
 0x67e   : > { %v906_v46 = vmul.f32 0.5, %v905_v45 }
 0x680   : > { %v907_v47 = vsub.f32 1.5, %v906_v46 }
 0x682   : > { %v908_v48 = vmul.f32 %v1345_v43, %v907_v47 }
 0x684   : > { %v912_v50 = vsel %vm911_vm2, %v1345_v43, %v908_v48 }
 0x685   : > { %v913_v52 = vmul.f32 %v912_v50, %v896_v37 }
 0x687   : > { %v918_v53 = vmul.f32 %v1338_v49, %v913_v52 }
 0x689   : > { %v923_v54 = vadd.f32 %v1339_v51, %v918_v53 }
 0x68b   : > { %924 = vst.msk [vmem:[%s522_s20] sm:$0xff] %vm588_vm3, %v923_v54 }
 0x68c PF: > { %s1208_s30 = sshll.u32 %s1484_s15, 3  ;;  %s1933_s21 = sld [smem:[#allocation30_spill]] }
 0x68d   : > { %s943_s10 = sshll.u32 %s522_s20, 4  ;;  %s1934_s27 = sand.u32 1, %s1472_s29   ;;  %s944_s10 = int_to_ptr.vmem [resolvable:$true] %s943_s10 }
 0x68e   : > { %s926_s18 = scalar_lea.sflag [#allocation5], %s1934_s27 }
 0x692   : > { %s941_s7 = scalar_lea.hbm %s1933_s21, %s1208_s30  ;;  %s1366_s25 = scalar_lea.hbm %s1933_s21, 16 }
 0x693   : > { %s945_s13 = sshll.u32 %s941_s7, 4  ;;  %s946_s13 = int_to_ptr.hbm [resolvable:$true] %s945_s13 }
 0x694   : > { %s1360_s12 = sshra.s32 %s946_s13, 4  ;;  %s1361_s12 = int_to_ptr.hbm [resolvable:$true] %s1360_s12 }
 0x695   : > { %s1362_s11 = scalar_lea.hbm %s1361_s12, 8  ;;  %p1367_p0 = scmp.lt.s32.totalorder %s1361_s12, %s1933_s21 }
 0x696   : > { %p1363_p9 = scmp.ne.s32.totalorder %s1361_s12, %s1362_s11  ;;  %p1368_p1 = scmp.lt.s32.totalorder %s1366_s25, %s1362_s11 }
 0x698   : > { %p1364_p10 = pnand %p1363_p9, %p1641_p3  ;;  %p1369_p4 = por %p1368_p1, %p1367_p0 }
 0x69a   : > { %p1365_p11 = pneg %p1364_p10 }
 0x69c   : > { %p1370_p2 = pnand %p1369_p4, %p1365_p11 }
 0x69e   : > { %1373 = shalt.err (!%p1370_p2)
}
 0x69f   : > { %1230 = dma.vmem_to_hbm [thread:$0]  (%p1641_p3), %s944_s10, 128, %s946_s13, %s926_s18  }
 0x6a0   : > { %s1209_s20 = sshll.u32 %s1484_s15, 2  ;;  %s1936_s19 = scalar_lea.vmem [#allocation6], %s1696_s23 }
 0x6a1   : > { %s959_s7 = sshll.u32 %s1936_s19, 4  ;;  %s955_s27 = sadd.s32 %s1480_s14, %s1209_s20  ;;  %s960_s7 = int_to_ptr.vmem [resolvable:$true] %s959_s7 }
 0x6a2   : > { %s1210_s24 = sshll.u32 %s955_s27, 3  ;;  %s1937_s12 = sld [smem:[#allocation31_spill]] }
 0x6a3   : > { %s1938_s30 = sand.u32 1, %s1460_s26  }
 0x6a4   : > { %s931_s22 = scalar_lea.sflag [#allocation7], %s1938_s30 }
 0x6a8   : > { %s957_s25 = scalar_lea.hbm %s1937_s12, %s1210_s24  ;;  %s1394_s14 = scalar_lea.hbm %s1937_s12, 64 }
 0x6a9   : > { %s961_s11 = sshll.u32 %s957_s25, 4  ;;  %s962_s11 = int_to_ptr.hbm [resolvable:$true] %s961_s11 }
 0x6aa   : > { %s1388_s0 = sshra.s32 %s962_s11, 4  ;;  %s1389_s0 = int_to_ptr.hbm [resolvable:$true] %s1388_s0 }
 0x6ab   : > { %s1390_s1 = scalar_lea.hbm %s1389_s0, 8  ;;  %p1395_p8 = scmp.lt.s32.totalorder %s1389_s0, %s1937_s12 }
 0x6ac   : > { %p1391_p5 = scmp.ne.s32.totalorder %s1389_s0, %s1390_s1  ;;  %p1396_p9 = scmp.lt.s32.totalorder %s1394_s14, %s1390_s1 }
 0x6ae   : > { %p1392_p3 = pnand %p1391_p5, %p1670_p12  ;;  %p1397_p10 = por %p1396_p9, %p1395_p8 }
 0x6b0   : > { %p1393_p6 = pneg %p1392_p3 }
 0x6b2   : > { %p1398_p11 = pnand %p1397_p10, %p1393_p6 }
 0x6b4   : > { %1401 = shalt.err (!%p1398_p11)
}
 0x6b5   : > { %1231 = dma.vmem_to_hbm [thread:$0]  (%p1670_p12), %s960_s7, 128, %s962_s11, %s931_s22  }
 0x6b6 PF: > { %s1939_s18 = sld [smem:[#allocation16_spill]] }
 0x6b7   : > { %s1940_s20 = sld [smem:[#allocation12_spill]] }
 0x6bc   : > { %p1241_p0 = scmp.ge.s32.totalorder %s1939_s18, 2 }
 0x6bd   : > { %s973_s27 = sand.u32 1, %s1940_s20  }
 0x6be   : > { %p1235_p1 = pnand %p1241_p0, %p1658_p7  ;;  %s974_s24 = scalar_lea.sflag [#allocation5], %s973_s27 }
 0x6c0   : > { %p1236_p4 = pneg %p1235_p1 }
 0x6c2   : > { %1447 = dma.done.wait (%p1236_p4), %s974_s24, 128  }
 0x6c3   : > { %1449 = vsyncadd (%p1236_p4), %s974_s24, 4294967168  ;;  %s1942_s0 = sld [smem:[#allocation10_spill]]  ;;  %p1238_p2 = pnand %p1241_p0, %p1682_p13 }
 0x6c5   : > { %p1239_p5 = pneg %p1238_p2 }
 0x6c9   : > { %s983_s17 = sand.u32 1, %s1942_s0  }
 0x6ca   : > { %s984_s28 = scalar_lea.sflag [#allocation7], %s983_s17 }
 0x6cb   : > { %1451 = dma.done.wait (%p1239_p5), %s984_s28, 128  }
 0x6cc   : > { %1453 = vsyncadd (%p1239_p5), %s984_s28, 4294967168  ;;  %s30_s18 = sadd.s32 1, %s1939_s18   ;;  %s1944_s7 = sld [smem:[#allocation11_spill]] }
 0x6cd   : > { %p27_p12 = scmp.ge.s32.totalorder %s30_s18, 10   ;;  %s1945_s27 = sld [smem:[#allocation23_spill]] }
 0x6ce   : > { %s1946_s16 = sld [smem:[#allocation13_spill]]  ;;  %s1952_s25 = smov %s1460_s26 }
 0x6cf   : > { %s1947_s30 = sld [smem:[#allocation22_spill]]  ;;  %s1954_s28 = smov %s1472_s29 }
 0x6d0   : > { %s1948_s14 = sld [smem:[#allocation14_spill]] }
 0x6d1   : > { %s1949_s15 = sld [smem:[#allocation15_spill]] }
 0x6d2   : > { %s1950_s11 = sld [smem:[#allocation17_spill]]  ;;  %s1953_s26 = smov %s1944_s7 }
 0x6d3   : > { %s1951_s17 = sld [smem:[#allocation19_spill]] }
 0x6d4   : > { %s1955_s29 = smov %s1946_s16  ;;  %29 = sbr.rel (!%p27_p12) target bundleno = 17 (0x11), region = 143 }
 0x6d8   : > { %s1956_s16 = smov %s1950_s11 }
 0x6d9   :  { %990 = vsyncpa [#allocation5], 1 }
 0x6da   :  { %992 = vsyncpa [#allocation5 + $0x1], 1 }
 0x6db   :  { %993 = vsyncpa [#allocation7], 1 }
 0x6dc   :  { %995 = vsyncpa [#allocation7 + $0x1], 1 }

</bundles_post_ra>
